<compile_context>
chip_gen: v5e
topology: v5e:2x2
jax: 0.10.0
libtpu: 0.0.40
codegen_flags: <defaults>
</compile_context>

<pallas_src>
import functools

import numpy as np
import jax
import jax.numpy as jnp
from jax import lax
from jax.experimental import pallas as pl
from jax.experimental.pallas import tpu as pltpu


def _round_up(n, m):
    return ((n + m - 1) // m) * m


# --------------------------------------------------------------------------
# Kernel 1: fused per-frame pass (one row-tile of frames per grid step)
#   z   = x @ [We | Wa | 0] + [be | ba | 0]      (bf16 operands, f32 accum)
#   zr  = ReLU on the encoder lanes only (lane-iota mask); alpha lanes kept raw
#   out = zr @ W2 + b2   where W2 routes h -> [yt|yv|ym] (cols 0:K_all) and an
#         identity block copies alpha into cols [K_all : K_all+3].
# One lane-dense (tile, 128) f32 output slab.
# --------------------------------------------------------------------------
def _frame_kernel(x_ref, w1_ref, b1_ref, w2_ref, b2_ref, out_ref, *, d_enc):
    z = jnp.dot(x_ref[...], w1_ref[...], preferred_element_type=jnp.float32)
    z = z + b1_ref[...]
    lane = lax.broadcasted_iota(jnp.int32, z.shape, 1)
    zr = jnp.where(lane < d_enc, jnp.maximum(z, 0.0), z)   # ReLU only encoder lanes
    out_ref[...] = (jnp.dot(zr, w2_ref[...], preferred_element_type=jnp.float32)
                    + b2_ref[...])


def frame_forward(xf, W1, b1, W2, b2, *, d_enc, tile=256):
    N, Din = xf.shape
    S2 = W2.shape[1]
    tile = min(tile, _round_up(max(N, 1), 128))    # don't over-pad tiny inputs
    Npad = _round_up(N, tile)
    if Npad != N:
        xf = jnp.pad(xf, ((0, Npad - N), (0, 0)))

    kernel = functools.partial(_frame_kernel, d_enc=d_enc)
    full = lambda a: pl.BlockSpec(a.shape, lambda i: (0,) * a.ndim)
    return pl.pallas_call(
        kernel,
        out_shape=jax.ShapeDtypeStruct((Npad, S2), jnp.float32),
        grid=(Npad // tile,),
        in_specs=[pl.BlockSpec((tile, Din), lambda i: (i, 0)),
                  full(W1), full(b1), full(W2), full(b2)],
        out_specs=pl.BlockSpec((tile, S2), lambda i: (i, 0)),
        compiler_params=pltpu.CompilerParams(
            dimension_semantics=("parallel",)),
    )(xf, W1, b1, W2, b2)


# --------------------------------------------------------------------------
# Kernel 2: permutation-invariant attention pooling, ALL THREE heads fused.
#   alpha layout (B, 3, Fpad): frames on the lane axis -> softmax is a lane
#   reduction.  Mask built in-kernel from int32 lengths + iota:
#     f <  len[b]        -> keep alpha
#     len[b] <= f < F    -> -40      (matches PyTorch's alpha[n:, ix] = -40)
#     f >= F (lane pad)  -> -1e30    (exactly excluded)
#   Weighted sum is one batched MXU dot: (B,3,Fpad) @ (B,Fpad,128) -> (B,3,128).
# --------------------------------------------------------------------------
def _pool_kernel(lens_ref, y_ref, a_ref, Y_ref, attn_ref, *, seq_len):
    a = a_ref[...]                                        # (B, 3, Fpad) f32
    lens = lens_ref[...]                                  # (B, 1) int32
    f_idx = lax.broadcasted_iota(jnp.int32, a.shape, 2)
    valid = f_idx < lens[:, :, None]                      # real frames
    in_seq = f_idx < seq_len                              # inside pad_sequence window
    a = jnp.where(valid, a, jnp.where(in_seq, -40.0, -1e30))
    m = jnp.max(a, axis=2, keepdims=True)
    e = jnp.exp(a - m)
    s = jnp.sum(e, axis=2, keepdims=True)
    attn = e / s                                          # exact divide (tolerance)
    attn_ref[...] = attn
    Y_ref[...] = jnp.einsum('bhf,bfk->bhk', attn, y_ref[...],
                            preferred_element_type=jnp.float32)


def attention_pool(lens, y, alpha, *, seq_len):
    B, Fpad, Kslab = y.shape
    vmem = pl.BlockSpec(memory_space=pltpu.MemorySpace.VMEM)
    kernel = functools.partial(_pool_kernel, seq_len=seq_len)
    return pl.pallas_call(
        kernel,
        out_shape=(jax.ShapeDtypeStruct((B, 3, Kslab), jnp.float32),
                   jax.ShapeDtypeStruct((B, 3, Fpad), jnp.float32)),
        in_specs=[vmem, vmem, vmem],
        out_specs=(vmem, vmem),
    )(lens, y, alpha)


# --------------------------------------------------------------------------
# Parameter packing into two lane-dense weight slabs (done once, outside kernels)
# --------------------------------------------------------------------------
def pack_params(params, *, use_bf16=True):
    We, be, Wt, bt, Wv, bv, Wm, bm, Wa, ba = params
    Din, D = We.shape
    Kt, Kv, Km = Wt.shape[1], Wv.shape[1], Wm.shape[1]
    K_all = Kt + Kv + Km
    S1 = _round_up(D + 3, 128)
    S2 = _round_up(K_all + 3, 128)

    W1 = jnp.zeros((Din, S1), jnp.float32)
    W1 = W1.at[:, :D].set(We).at[:, D:D + 3].set(Wa)
    b1 = jnp.zeros((1, S1), jnp.float32)
    b1 = b1.at[:, :D].set(be).at[:, D:D + 3].set(ba)

    W2 = jnp.zeros((S1, S2), jnp.float32)
    W2 = W2.at[:D, :K_all].set(jnp.concatenate([Wt, Wv, Wm], axis=1))
    W2 = W2.at[D:D + 3, K_all:K_all + 3].set(jnp.eye(3, dtype=jnp.float32))
    b2 = jnp.zeros((1, S2), jnp.float32)
    b2 = b2.at[:, :K_all].set(jnp.concatenate([bt, bv, bm], axis=1))

    if use_bf16:
        W1 = W1.astype(jnp.bfloat16)          # big dot in bf16 (v6e/v7x MXU native)
    meta = dict(D=D, Kt=Kt, Kv=Kv, Km=Km, K_all=K_all, S2=S2)
    return W1, b1, W2, b2, meta


# --------------------------------------------------------------------------
# Full forward (num_frames is a static python list, as in the PyTorch module)
# --------------------------------------------------------------------------
def video_classifier_forward(x, num_frames, params, *, tile=256, use_bf16=True):
    num_frames = [int(n) for n in num_frames]
    N = x.shape[0]
    assert sum(num_frames) == N
    B, F = len(num_frames), max(num_frames)

    W1, b1, W2, b2, meta = pack_params(params, use_bf16=use_bf16)
    D, Kt, Kv, Km, K_all, S2 = (meta[k] for k in ("D", "Kt", "Kv", "Km", "K_all", "S2"))

    xf = x.reshape(N, -1)
    if use_bf16:
        xf = xf.astype(jnp.bfloat16)

    out = frame_forward(xf, W1, b1, W2, b2, d_enc=D, tile=tile)     # (Npad, S2) f32

    # pad_sequence equivalent: ONE static gather (built host-side in numpy)
    # instead of 6 python-loop pad calls.  Index N points at an explicit zero row;
    # padded frames get ~exp(-40) attention weight so their contribution is ~1e-19.
    Fpad = _round_up(max(F, 1), 128)          # frames -> lane axis of pool kernel
    starts = np.cumsum([0] + num_frames[:-1])
    idx = np.full((B, Fpad), N, dtype=np.int32)
    for b, (s, n) in enumerate(zip(starts, num_frames)):
        idx[b, :n] = s + np.arange(n, dtype=np.int32)
    combined = jnp.concatenate([out[:N], jnp.zeros((1, S2), jnp.float32)], axis=0)
    gathered = combined[jnp.asarray(idx)]                            # (B, Fpad, S2)

    alpha_in = jnp.transpose(gathered[:, :, K_all:K_all + 3], (0, 2, 1))  # (B,3,Fpad)
    lens = jnp.asarray(num_frames, jnp.int32).reshape(B, 1)

    Y_all, attn_all = attention_pool(lens, gathered, alpha_in, seq_len=F)

    Y_type = Y_all[:, 0, 0:Kt]
    Y_view = Y_all[:, 1, Kt:Kt + Kv]
    Y_mode = Y_all[:, 2, Kt + Kv:K_all]
    to_attn = lambda h: jnp.transpose(attn_all[:, h, :F])[:, :, None]     # (F,B,1)
    return ({'type': Y_type, 'mode': Y_mode, 'view': Y_view},
            {'type': to_attn(0), 'mode': to_attn(2), 'view': to_attn(1)})


# --------------------------------------------------------------------------
# Pure-JAX reference (mirrors the PyTorch forward literally; same bf16 cast on
# the big dots so tolerances stay tight)
# --------------------------------------------------------------------------
def pad_segments(h, num_frames):
    F = max(num_frames)
    segs, start = [], 0
    for n in num_frames:
        seg = h[start:start + n]
        pad = [(0, F - n)] + [(0, 0)] * (h.ndim - 1)
        segs.append(jnp.pad(seg, pad))
        start += n
    return jnp.stack(segs, axis=1)


def _mm(a, b, use_bf16):
    if use_bf16:
        a, b = a.astype(jnp.bfloat16), b.astype(jnp.bfloat16)
    return jnp.dot(a, b, preferred_element_type=jnp.float32)


def reference_forward(x, num_frames, params, *, use_bf16=True):
    We, be, Wt, bt, Wv, bv, Wm, bm, Wa, ba = params
    N = x.shape[0]
    xf = x.reshape(N, -1)
    h = jnp.maximum(_mm(xf, We, use_bf16) + be, 0.0)
    alpha = _mm(xf, Wa, use_bf16) + ba
    h_pad = pad_segments(h, num_frames)                   # (F,B,D) zero padded
    yt = jnp.dot(h_pad, Wt, preferred_element_type=jnp.float32) + bt
    yv = jnp.dot(h_pad, Wv, preferred_element_type=jnp.float32) + bv
    ym = jnp.dot(h_pad, Wm, preferred_element_type=jnp.float32) + bm
    F = max(num_frames)
    mask = jnp.arange(F)[:, None] < jnp.array(num_frames)[None, :]

    def head(alpha_col, y):
        a = pad_segments(alpha_col, num_frames)           # (F,B,1)
        a = jnp.where(mask[:, :, None], a, -40.0)
        attn = jax.nn.softmax(a, axis=0)
        return jnp.sum(y * attn, axis=0), attn

    Yt, at = head(alpha[:, 0:1], yt)
    Yv, av = head(alpha[:, 1:2], yv)
    Ym, am = head(alpha[:, 2:3], ym)
    return ({'type': Yt, 'mode': Ym, 'view': Yv},
            {'type': at, 'mode': am, 'view': av})


def init_params(key, Din, D, Kt, Kv, Km):
    ks = jax.random.split(key, 10)
    f = lambda k, s: jax.random.normal(k, s, jnp.float32) * 0.05
    return (f(ks[0], (Din, D)), f(ks[1], (1, D)),
            f(ks[2], (D, Kt)), f(ks[3], (1, Kt)),
            f(ks[4], (D, Kv)), f(ks[5], (1, Kv)),
            f(ks[6], (D, Km)), f(ks[7], (1, Km)),
            f(ks[8], (Din, 3)), f(ks[9], (1, 3)))


if __name__ == "__main__":
    key = jax.random.PRNGKey(0)
    num_frames = [5, 8, 3]          # 3 videos, 16 frames total
    N = sum(num_frames)
    C, H, W = 4, 16, 16
    Din, D, Kt, Kv, Km = C * H * W, 32, 4, 5, 3

    kx, kp = jax.random.split(key)
    x = jax.random.normal(kx, (N, C, H, W), jnp.float32)
    params = init_params(kp, Din, D, Kt, Kv, Km)

    out, attn = video_classifier_forward(x, num_frames, params, use_bf16=True)
    jax.block_until_ready((out, attn))

    ref_out, ref_attn = reference_forward(x, num_frames, params, use_bf16=True)
    for k in ("type", "view", "mode"):
        assert out[k].shape == ref_out[k].shape, f"Y shape mismatch: {k}"
        assert attn[k].shape == ref_attn[k].shape, f"attn shape mismatch: {k}"
        assert jnp.allclose(out[k], ref_out[k], atol=2e-3, rtol=2e-3), f"Y mismatch: {k}"
        assert jnp.allclose(attn[k], ref_attn[k], atol=1e-3, rtol=1e-3), f"attn mismatch: {k}"

    print("KERNEL_OK")
</pallas_src>

<mosaic_0001>
module attributes {stable_mosaic.version = 11 : i64} {
  func.func @_frame_kernel(%arg0: i32, %arg1: memref<128x1024xbf16, #tpu.memory_space<vmem>>, %arg2: memref<1024x128xbf16, #tpu.memory_space<vmem>>, %arg3: memref<1x128xf32, #tpu.memory_space<vmem>>, %arg4: memref<128x128xf32, #tpu.memory_space<vmem>>, %arg5: memref<1x128xf32, #tpu.memory_space<vmem>>, %arg6: memref<128x128xf32, #tpu.memory_space<vmem>>) attributes {dimension_semantics = [#tpu.dimension_semantics<parallel>], iteration_bounds = array<i64: 1>, scalar_prefetch = 0 : i64, scratch_operands = 0 : i64, tpu.core_type = #tpu.core_type<tc>, window_params = [{transform_indices = @transform_0, window_bounds = array<i64: 128, 1024>}, {pipeline_mode = #tpu.pipeline_mode<synchronous>, transform_indices = @transform_1, window_bounds = array<i64: 1024, 128>}, {pipeline_mode = #tpu.pipeline_mode<synchronous>, transform_indices = @transform_2, window_bounds = array<i64: 1, 128>}, {pipeline_mode = #tpu.pipeline_mode<synchronous>, transform_indices = @transform_3, window_bounds = array<i64: 128, 128>}, {pipeline_mode = #tpu.pipeline_mode<synchronous>, transform_indices = @transform_4, window_bounds = array<i64: 1, 128>}, {transform_indices = @transform_5, window_bounds = array<i64: 128, 128>}]} {
    %c0 = arith.constant 0 : index
    %c0_0 = arith.constant 0 : index
    %0 = vector.load %arg1[%c0, %c0_0] : memref<128x1024xbf16, #tpu.memory_space<vmem>>, vector<128x1024xbf16>
    %c0_1 = arith.constant 0 : index
    %c0_2 = arith.constant 0 : index
    %1 = vector.load %arg2[%c0_1, %c0_2] : memref<1024x128xbf16, #tpu.memory_space<vmem>>, vector<1024x128xbf16>
    %cst = arith.constant dense<0.000000e+00> : vector<128x128xf32>
    %2 = tpu.matmul %0, %1, %cst {dimension_numbers = #tpu.dot_dimension_numbers<[1], [0], [0], [1], [0, 0, 1, 1], [], []>} : vector<128x1024xbf16>, vector<1024x128xbf16>, vector<128x128xf32> -> vector<128x128xf32>
    %c0_3 = arith.constant 0 : index
    %c0_4 = arith.constant 0 : index
    %3 = vector.load %arg3[%c0_3, %c0_4] : memref<1x128xf32, #tpu.memory_space<vmem>>, vector<1x128xf32>
    %4 = vector.broadcast %3 : vector<1x128xf32> to vector<128x128xf32>
    %5 = arith.addf %2, %4 : vector<128x128xf32>
    %6 = tpu.iota {dimensions = array<i32: 1>} : vector<128x128xi32>
    %c32_i32 = arith.constant 32 : i32
    %7 = vector.broadcast %c32_i32 : i32 to vector<128x128xi32>
    %8 = arith.cmpi slt, %6, %7 : vector<128x128xi32>
    %cst_5 = arith.constant 0.000000e+00 : f32
    %9 = vector.broadcast %cst_5 : f32 to vector<128x128xf32>
    %10 = arith.maximumf %5, %9 : vector<128x128xf32>
    %11 = arith.select %8, %10, %5 : vector<128x128xi1>, vector<128x128xf32>
    %c0_6 = arith.constant 0 : index
    %c0_7 = arith.constant 0 : index
    %12 = vector.load %arg4[%c0_6, %c0_7] : memref<128x128xf32, #tpu.memory_space<vmem>>, vector<128x128xf32>
    %cst_8 = arith.constant dense<0.000000e+00> : vector<128x128xf32>
    %13 = tpu.matmul %11, %12, %cst_8 {dimension_numbers = #tpu.dot_dimension_numbers<[1], [0], [0], [1], [0, 0, 1, 1], [], []>} : vector<128x128xf32>, vector<128x128xf32>, vector<128x128xf32> -> vector<128x128xf32>
    %c0_9 = arith.constant 0 : index
    %c0_10 = arith.constant 0 : index
    %14 = vector.load %arg5[%c0_9, %c0_10] : memref<1x128xf32, #tpu.memory_space<vmem>>, vector<1x128xf32>
    %15 = vector.broadcast %14 : vector<1x128xf32> to vector<128x128xf32>
    %16 = arith.addf %13, %15 : vector<128x128xf32>
    %c0_11 = arith.constant 0 : index
    %c0_12 = arith.constant 0 : index
    %17 = vector.load %arg6[%c0_11, %c0_12] : memref<128x128xf32, #tpu.memory_space<vmem>>, vector<128x128xf32>
    tpu.vector_store %arg6[%c0_11, %c0_12], %16 {strides = array<i32>} : memref<128x128xf32, #tpu.memory_space<vmem>>, vector<128x128xf32>,
    return
  }
  func.func @transform_0(%arg0: i32) -> (i32, i32) {
    %c0_i32 = arith.constant 0 : i32
    %c0_i32_0 = arith.constant 0 : i32
    return %arg0, %c0_i32 : i32, i32
  }
  func.func @transform_1(%arg0: i32) -> (i32, i32) {
    %c0_i32 = arith.constant 0 : i32
    %c0_i32_0 = arith.constant 0 : i32
    %c0_i32_1 = arith.constant 0 : i32
    return %c0_i32, %c0_i32_0 : i32, i32
  }
  func.func @transform_2(%arg0: i32) -> (i32, i32) {
    %c0_i32 = arith.constant 0 : i32
    %c0_i32_0 = arith.constant 0 : i32
    %c0_i32_1 = arith.constant 0 : i32
    return %c0_i32, %c0_i32_0 : i32, i32
  }
  func.func @transform_3(%arg0: i32) -> (i32, i32) {
    %c0_i32 = arith.constant 0 : i32
    %c0_i32_0 = arith.constant 0 : i32
    %c0_i32_1 = arith.constant 0 : i32
    return %c0_i32, %c0_i32_0 : i32, i32
  }
  func.func @transform_4(%arg0: i32) -> (i32, i32) {
    %c0_i32 = arith.constant 0 : i32
    %c0_i32_0 = arith.constant 0 : i32
    %c0_i32_1 = arith.constant 0 : i32
    return %c0_i32, %c0_i32_0 : i32, i32
  }
  func.func @transform_5(%arg0: i32) -> (i32, i32) {
    %c0_i32 = arith.constant 0 : i32
    %c0_i32_0 = arith.constant 0 : i32
    return %arg0, %c0_i32 : i32, i32
  }
}

</mosaic_0001>

<bundles_post_ra>
// kernel: tpu_custom_call.1
= control target key start
LH: loop header
LB: loop body
LE: loop exit
PB: predicated region body
PF: predicated region fallthrough
CT: control target
= control target key end

     0   :  { %10 = vsyncpa [#allocation3], 0  ;;  %s2495_s0 = inlined_call_operand.hbm [shape: bf16[128,1024], index: 0, kind: input, shape index: {}]   ;;  %s2496_s1 = inlined_call_operand.hbm [shape: bf16[1024,128], index: 1, kind: input, shape index: {}]   ;;  %s2497_s2 = inlined_call_operand.vmem [shape: f32[1,128], index: 2, kind: input, shape index: {}]   ;;  %s2498_s3 = inlined_call_operand.hbm [shape: f32[128,128], index: 3, kind: input, shape index: {}]   ;;  %s2499_s4 = inlined_call_operand.vmem [shape: f32[1,128], index: 4, kind: input, shape index: {}]   ;;  %s2500_s5 = inlined_call_operand.hbm [shape: f32[128,128], index: 5, kind: output, shape index: {}]  }
   0x1   :  { %11 = vsyncpa [#allocation6], 0  ;;  %s30_s20 = sshll.u32 %s2496_s1, 4  ;;  %s31_s20 = int_to_ptr.hbm [resolvable:$true] %s30_s20 }
   0x2   :  { %12 = vsyncpa [#allocation4], 0  ;;  %s2294_s21 = smov [#allocation5]   ;;  %s17_s25 = sshll.u32 %s2495_s0, 4  ;;  %s18_s25 = int_to_ptr.hbm [resolvable:$true] %s17_s25 }
   0x3   :  { %s32_s22 = sshll.u32 %s2294_s21, 4  ;;  %s2295_s26 = smov 64   ;;  %s33_s22 = int_to_ptr.vmem [resolvable:$true] %s32_s22 }
   0x4   :  { %s2296_s27 = smov 4   ;;  %s2297_s28 = smov [#allocation2]  }
   0x5   :  { %38 = dma.hbm_to_vmem [thread:$0]  %s31_s20, 8192, %s33_s22, [#allocation6], %s2295_s26, %s2295_s26, %s2296_s27  }
   0x6   :  { %s19_s29 = sshll.u32 %s2297_s28, 4  ;;  %s2298_s30 = smov 512   ;;  %s20_s29 = int_to_ptr.vmem [resolvable:$true] %s19_s29 }
   0x7   :  { %s2299_s6 = smov 32   ;;  %s45_s8 = sshll.u32 %s2498_s3, 4  ;;  %s46_s8 = int_to_ptr.hbm [resolvable:$true] %s45_s8 }
   0x8   :  { %25 = dma.hbm_to_vmem [thread:$0]  %s18_s25, 8192, %s20_s29, [#allocation3], %s2298_s30, %s2298_s30, %s2299_s6  }
   0x9   :  { %s2300_s9 = smov [#allocation7]   ;;  %s2301_s11 = smov 128  }
   0xa   :  { %s47_s10 = sshll.u32 %s2300_s9, 4  ;;  %s2302_s0 = smov 8   ;;  %s48_s10 = int_to_ptr.vmem [resolvable:$true] %s47_s10 }
   0xb   :  { %53 = dma.hbm_to_vmem [thread:$0]  %s46_s8, 2048, %s48_s10, [#allocation6], %s2301_s11, %s2301_s11, %s2302_s0  }
   0xc   :  { %2288 = dma.done.wait [#allocation3], 8192  }
   0xd   :  { %2289 = vsyncadd [#allocation3], 4294959104 }
   0xe   :  { %2290 = dma.done.wait [#allocation6], 10240  }
   0xf   :  { %2291 = vsyncadd [#allocation6], 4294957056  ;;  %v2099_v0 = vld [vmem:[#allocation5 + $0x38] sm:$0xff]  ;;  %v2098_v1 = vld [vmem:[#allocation5 + $0x30] sm:$0xff]  ;;  %s1502_s17 = sshll.u32 %s2500_s5, 4  ;;  %s1503_s17 = int_to_ptr.hbm [resolvable:$true] %s1502_s17 }
  0x10   :  { %2156 = vmatpush.bf16.msra.mxu1 %v2099_v0  ;;  %2157 = vmatpush.bf16.msra.mxu2 %v2099_v0  ;;  %v2097_v2 = vld [vmem:[#allocation5 + $0x28] sm:$0xff]  ;;  %v2096_v3 = vld [vmem:[#allocation5 + $0x20] sm:$0xff]  ;;  %v2095_v4 = vld [vmem:[#allocation5 + $0x18] sm:$0xff] }
  0x11   :  { %2158 = vmatpush.bf16.msra.mxu3 %v2099_v0  ;;  %968 = vmatpush.bf16.msra.mxu0 %v2099_v0  ;;  %v2094_v5 = vld [vmem:[#allocation5 + $0x10] sm:$0xff]  ;;  %v2093_v6 = vld [vmem:[#allocation5 + $0x8] sm:$0xff]  ;;  %v2092_v7 = vld [vmem:[#allocation5] sm:$0xff] }
  0x12   :  { %v1582_v8 = vld [vmem:[#allocation2 + $0x80] sm:$0xf]  ;;  %v2115_v14 = vld [vmem:[#allocation5 + $0xb8] sm:$0xff]  ;;  %v2114_v22 = vld [vmem:[#allocation5 + $0xb0] sm:$0xff] }
  0x13   :  { %v2048_v9 = vld [vmem:[#allocation2 + $0x9c] sm:$0xf0]  ;;  %v2107_v15 = vld [vmem:[#allocation5 + $0x78] sm:$0xff]  ;;  %v2106_v24 = vld [vmem:[#allocation5 + $0x70] sm:$0xff] }
  0x14   :  { %2159 = vmatpush.bf16.msra.mxu1 %v2098_v1  ;;  %2160 = vmatpush.bf16.msra.mxu2 %v2098_v1  ;;  %v1646_v10 = vld [vmem:[#allocation2 + $0x100] sm:$0xf]  ;;  %v2123_v16 = vld [vmem:[#allocation5 + $0xf8] sm:$0xff]  ;;  %v1583_v17 = vor.u32 %v2048_v9, %v1582_v8  ;;  %v2122_v25 = vld [vmem:[#allocation5 + $0xf0] sm:$0xff] }
  0x15   :  { %2161 = vmatpush.bf16.msra.mxu3 %v2098_v1  ;;  %969 = vmatpush.bf16.msra.mxu0 %v2098_v1  ;;  %v2064_v11 = vld [vmem:[#allocation2 + $0x11c] sm:$0xf0]  ;;  %v2131_v23 = vld [vmem:[#allocation5 + $0x138] sm:$0xff]  ;;  %v2113_v27 = vld [vmem:[#allocation5 + $0xa8] sm:$0xff] }
  0x16   :  { %v1710_v12 = vld [vmem:[#allocation2 + $0x180] sm:$0xf]  ;;  %v1647_v18 = vor.u32 %v2064_v11, %v1646_v10  ;;  %v2130_v28 = vld [vmem:[#allocation5 + $0x130] sm:$0xff]  ;;  %v2105_v29 = vld [vmem:[#allocation5 + $0x68] sm:$0xff] }
  0x17   :  { %v2080_v13 = vld [vmem:[#allocation2 + $0x19c] sm:$0xf0]  ;;  %v2121_v30 = vld [vmem:[#allocation5 + $0xe8] sm:$0xff]  ;;  %v2111_v41 = vld [vmem:[#allocation5 + $0x98] sm:$0xff] }
  0x18   :  { %2162 = vmatpush.bf16.msra.mxu1 %v2097_v2  ;;  %2163 = vmatpush.bf16.msra.mxu2 %v2097_v2  ;;  %v1711_v19 = vor.u32 %v2080_v13, %v1710_v12  ;;  %v1518_v20 = vld [vmem:[#allocation2] sm:$0xf]  ;;  %v2129_v32 = vld [vmem:[#allocation5 + $0x128] sm:$0xff]  ;;  %v2103_v43 = vld [vmem:[#allocation5 + $0x58] sm:$0xff] }
  0x19   :  { %2164 = vmatpush.bf16.msra.mxu3 %v2097_v2  ;;  %970 = vmatpush.bf16.msra.mxu0 %v2097_v2  ;;  %v2032_v21 = vld [vmem:[#allocation2 + $0x1c] sm:$0xf0]  ;;  %v2119_v44 = vld [vmem:[#allocation5 + $0xd8] sm:$0xff]  ;;  %v2110_v50 = vld [vmem:[#allocation5 + $0x90] sm:$0xff] }
  0x1a   :  { %v1519_v26 = vor.u32 %v2032_v21, %v1518_v20  ;;  %v2112_v31 = vld [vmem:[#allocation5 + $0xa0] sm:$0xff]  ;;  %v2127_v51 = vld [vmem:[#allocation5 + $0x118] sm:$0xff]  ;;  %v2102_v52 = vld [vmem:[#allocation5 + $0x50] sm:$0xff] }
  0x1b   :  { %v2104_v33 = vld [vmem:[#allocation5 + $0x60] sm:$0xff]  ;;  %v2118_v53 = vld [vmem:[#allocation5 + $0xd0] sm:$0xff]  ;;  %v2109_v55 = vld [vmem:[#allocation5 + $0x88] sm:$0xff] }
  0x1c   :  { %2165 = vmatpush.bf16.msra.mxu1 %v2096_v3  ;;  %2166 = vmatpush.bf16.msra.mxu2 %v2096_v3  ;;  %v2120_v34 = vld [vmem:[#allocation5 + $0xe0] sm:$0xff]  ;;  %v2126_v56 = vld [vmem:[#allocation5 + $0x110] sm:$0xff]  ;;  %v2101_v57 = vld [vmem:[#allocation5 + $0x48] sm:$0xff] }
  0x1d   :  { %2167 = vmatpush.bf16.msra.mxu3 %v2096_v3  ;;  %971 = vmatpush.bf16.msra.mxu0 %v2096_v3  ;;  %v1614_v35 = vld [vmem:[#allocation2 + $0xc0] sm:$0xf]  ;;  %v2117_v58 = vld [vmem:[#allocation5 + $0xc8] sm:$0xff]  ;;  %v2028_v63 = vld [vmem:[#allocation2 + $0x4] sm:$0xf] }
  0x1e   :  { %v2056_v36 = vld [vmem:[#allocation2 + $0xdc] sm:$0xf0]  ;;  %v2125_v60 = vld [vmem:[#allocation5 + $0x108] sm:$0xff]  ;;  %v1520_v0 = vld [vmem:[#allocation2 + $0x20] sm:$0xf0] }
  0x1f   :  { %v1678_v37 = vld [vmem:[#allocation2 + $0x140] sm:$0xf]  ;;  %v1615_v45 = vor.u32 %v2056_v36, %v1614_v35  ;;  %v2147_v1 = vld [vmem:[#allocation5 + $0x1b8] sm:$0xff]  ;;  %v1526_v3 = vld [vmem:[#allocation2 + $0x8] sm:$0xf]  ;;  %v1523_v9 = vor.u32 %v2028_v63, %v1520_v0 }
  0x20   :  { %2168 = vmatpush.bf16.msra.mxu1 %v2095_v4  ;;  %2169 = vmatpush.bf16.msra.mxu2 %v2095_v4  ;;  %v2072_v38 = vld [vmem:[#allocation2 + $0x15c] sm:$0xf0]  ;;  %v2155_v2 = vld [vmem:[#allocation5 + $0x1f8] sm:$0xff]  ;;  %v1534_v12 = vld [vmem:[#allocation2 + $0x10] sm:$0xf] }
  0x21   :  { %2170 = vmatpush.bf16.msra.mxu3 %v2095_v4  ;;  %972 = vmatpush.bf16.msra.mxu0 %v2095_v4  ;;  %v1742_v39 = vld [vmem:[#allocation2 + $0x1c0] sm:$0xf]  ;;  %v1679_v46 = vor.u32 %v2072_v38, %v1678_v37  ;;  %v2033_v4 = vld [vmem:[#allocation2 + $0x24] sm:$0xf0]  ;;  %v2034_v13 = vld [vmem:[#allocation2 + $0x2c] sm:$0xf0] }
  0x22   :  { %v2088_v40 = vld [vmem:[#allocation2 + $0x1dc] sm:$0xf0]  ;;  %v1527_v10 = vor.u32 %v2033_v4, %v1526_v3  ;;  %v2137_v20 = vld [vmem:[#allocation5 + $0x168] sm:$0xff]  ;;  %v2036_v21 = vld [vmem:[#allocation2 + $0x44] sm:$0xf] }
  0x23   :  { %v2128_v42 = vld [vmem:[#allocation5 + $0x120] sm:$0xff]  ;;  %v1743_v47 = vor.u32 %v2088_v40, %v1742_v39  ;;  %v1590_v38 = vld [vmem:[#allocation2 + $0x88] sm:$0xf]  ;;  %v2045_v40 = vld [vmem:[#allocation2 + $0x8c] sm:$0xf] }
  0x24   :  { %2171 = vmatpush.bf16.msra.mxu1 %v2094_v5  ;;  %2172 = vmatpush.bf16.msra.mxu2 %v2094_v5  ;;  %v1550_v48 = vld [vmem:[#allocation2 + $0x40] sm:$0xf]  ;;  %v2044_v36 = vld [vmem:[#allocation2 + $0x84] sm:$0xf]  ;;  %v2049_v39 = vld [vmem:[#allocation2 + $0xa4] sm:$0xf0] }
  0x25   :  { %2173 = vmatpush.bf16.msra.mxu3 %v2094_v5  ;;  %973 = vmatpush.bf16.msra.mxu0 %v2094_v5  ;;  %v2040_v49 = vld [vmem:[#allocation2 + $0x5c] sm:$0xf0]  ;;  %v2139_v5 = vld [vmem:[#allocation5 + $0x178] sm:$0xff]  ;;  %v1584_v37 = vld [vmem:[#allocation2 + $0xa0] sm:$0xf0] }
  0x26   :  { %v1551_v54 = vor.u32 %v2040_v49, %v1550_v48  ;;  %v2108_v59 = vld [vmem:[#allocation5 + $0x80] sm:$0xff]  ;;  %v2143_v48 = vld [vmem:[#allocation5 + $0x198] sm:$0xff]  ;;  %v2142_v63 = vld [vmem:[#allocation5 + $0x190] sm:$0xff] }
  0x27   :  { %v2100_v61 = vld [vmem:[#allocation5 + $0x40] sm:$0xff]  ;;  %v2151_v49 = vld [vmem:[#allocation5 + $0x1d8] sm:$0xff]  ;;  %v2150_v0 = vld [vmem:[#allocation5 + $0x1d0] sm:$0xff] }
  0x28   :  { %2174 = vmatpush.bf16.msra.mxu1 %v2093_v6  ;;  %2175 = vmatpush.bf16.msra.mxu2 %v2093_v6  ;;  %v2116_v62 = vld [vmem:[#allocation5 + $0xc0] sm:$0xff]  ;;  %v1654_v4 = vld [vmem:[#allocation2 + $0x108] sm:$0xf] }
  0x29   :  { %2176 = vmatpush.bf16.msra.mxu3 %v2093_v6  ;;  %974 = vmatpush.bf16.msra.mxu0 %v2093_v6  ;;  %v2029_v6 = vld [vmem:[#allocation2 + $0xc] sm:$0xf]  ;;  %v2124_v8 = vld [vmem:[#allocation5 + $0x100] sm:$0xff] }
  0x2a   :  { %v2136_v35 = vld [vmem:[#allocation5 + $0x160] sm:$0xff] }
  0x2b   :  { %v1648_v3 = vld [vmem:[#allocation2 + $0x120] sm:$0xf0] }
  0x2c   :  { %2177 = vmatpush.bf16.msra.mxu1 %v2092_v7  ;;  %2178 = vmatpush.bf16.msra.mxu2 %v2092_v7 }
  0x2d   :  { %2179 = vmatpush.bf16.msra.mxu3 %v2092_v7  ;;  %975 = vmatpush.bf16.msra.mxu0 %v2092_v7  ;;  %v1528_v7 = vld [vmem:[#allocation2 + $0x28] sm:$0xf0] }
  0x2e   :  { %v1531_v11 = vor.u32 %v2029_v6, %v1528_v7  ;;  %v2061_v6 = vld [vmem:[#allocation2 + $0x10c] sm:$0xf] }
  0x2f   :  { %986 = vmatmul.bf16.vlgmr.msra.gmra.mxu1 %v1583_v17  ;;  %996 = vmatmul.bf16.vlgmr.msra.gmra.mxu2 %v1647_v18  ;;  %v1535_v17 = vor.u32 %v2034_v13, %v1534_v12  ;;  %v2145_v18 = vld [vmem:[#allocation5 + $0x1a8] sm:$0xff]  ;;  %v2066_v12 = vld [vmem:[#allocation2 + $0x12c] sm:$0xf0] }
  0x30   :  { %1066 = vmatpush.bf16.msrb.mxu2 %v2115_v14  ;;  %1017 = vmatpush.bf16.msrb.mxu1 %v2107_v15  ;;  %v2146_v14 = vld [vmem:[#allocation5 + $0x1b0] sm:$0xff]  ;;  %v1656_v7 = vld [vmem:[#allocation2 + $0x128] sm:$0xf0] }
  0x31   :  { %1115 = vmatpush.bf16.msrb.mxu3 %v2123_v16  ;;  %1164 = vmatpush.bf16.msrb.mxu0 %v2131_v23  ;;  %v2154_v15 = vld [vmem:[#allocation5 + $0x1f0] sm:$0xff]  ;;  %v1558_v23 = vld [vmem:[#allocation2 + $0x48] sm:$0xf] }
  0x32   :  { %1006 = vmatmul.bf16.vlgmr.msra.gmra.mxu3 %v1711_v19  ;;  %976 = vmatmul.bf16.vlgmr.msra.gmra.mxu0 %v1519_v26  ;;  %v2138_v16 = vld [vmem:[#allocation5 + $0x170] sm:$0xff]  ;;  %v2153_v19 = vld [vmem:[#allocation5 + $0x1e8] sm:$0xff] }
  0x33   :  { %v1560_v26 = vld [vmem:[#allocation2 + $0x68] sm:$0xf0] }
  0x34   :  { %1067 = vmatpush.bf16.msrb.mxu2 %v2114_v22  ;;  %1018 = vmatpush.bf16.msrb.mxu1 %v2106_v24  ;;  %v1552_v22 = vld [vmem:[#allocation2 + $0x60] sm:$0xf0]  ;;  %v2041_v24 = vld [vmem:[#allocation2 + $0x64] sm:$0xf0] }
  0x35   :  { %1116 = vmatpush.bf16.msrb.mxu3 %v2122_v25  ;;  %1165 = vmatpush.bf16.msrb.mxu0 %v2130_v28  ;;  %v2037_v25 = vld [vmem:[#allocation2 + $0x4c] sm:$0xf]  ;;  %v1559_v28 = vor.u32 %v2041_v24, %v1558_v23 }
  0x38   :  { %1068 = vmatpush.bf16.msrb.mxu2 %v2113_v27  ;;  %1019 = vmatpush.bf16.msrb.mxu1 %v2105_v29  ;;  %v1555_v27 = vor.u32 %v2036_v21, %v1552_v22  ;;  %v1563_v29 = vor.u32 %v2037_v25, %v1560_v26  ;;  %v2069_v21 = vld [vmem:[#allocation2 + $0x14c] sm:$0xf]  ;;  %v1694_v26 = vld [vmem:[#allocation2 + $0x150] sm:$0xf] }
  0x39   :  { %1117 = vmatpush.bf16.msrb.mxu3 %v2121_v30  ;;  %1166 = vmatpush.bf16.msrb.mxu0 %v2129_v32  ;;  %v1566_v30 = vld [vmem:[#allocation2 + $0x50] sm:$0xf]  ;;  %v1688_v22 = vld [vmem:[#allocation2 + $0x168] sm:$0xf0] }
  0x3a   :  { %v1691_v25 = vor.u32 %v2069_v21, %v1688_v22 }
  0x3c   :  { %1069 = vmatpush.bf16.msrb.mxu2 %v2112_v31  ;;  %1020 = vmatpush.bf16.msrb.mxu1 %v2104_v33  ;;  %v2042_v31 = vld [vmem:[#allocation2 + $0x6c] sm:$0xf0]  ;;  %v2144_v33 = vld [vmem:[#allocation5 + $0x1a0] sm:$0xff] }
  0x3d   :  { %1118 = vmatpush.bf16.msrb.mxu3 %v2120_v34  ;;  %1167 = vmatpush.bf16.msrb.mxu0 %v2128_v42  ;;  %v1567_v32 = vor.u32 %v2042_v31, %v1566_v30  ;;  %v2152_v34 = vld [vmem:[#allocation5 + $0x1e0] sm:$0xff]  ;;  %v1587_v42 = vor.u32 %v2044_v36, %v1584_v37  ;;  %v2077_v36 = vld [vmem:[#allocation2 + $0x18c] sm:$0xf] }
  0x3e   :  { %v2148_v30 = vld [vmem:[#allocation5 + $0x1c0] sm:$0xff]  ;;  %v1720_v37 = vld [vmem:[#allocation2 + $0x1a8] sm:$0xf0] }
  0x3f   :  { %991 = vmatmul.bf16.gmra.mxu1 %v1615_v45  ;;  %1001 = vmatmul.bf16.gmra.mxu2 %v1679_v46  ;;  %v1598_v45 = vld [vmem:[#allocation2 + $0x90] sm:$0xf]  ;;  %v2132_v31 = vld [vmem:[#allocation5 + $0x140] sm:$0xff] }
  0x40   :  { %1070 = vmatpush.bf16.msrb.mxu2 %v2111_v41  ;;  %1021 = vmatpush.bf16.msrb.mxu1 %v2103_v43  ;;  %v1592_v41 = vld [vmem:[#allocation2 + $0xa8] sm:$0xf0]  ;;  %v1591_v43 = vor.u32 %v2049_v39, %v1590_v38  ;;  %v2050_v46 = vld [vmem:[#allocation2 + $0xac] sm:$0xf0] }
  0x41   :  { %1119 = vmatpush.bf16.msrb.mxu3 %v2119_v44  ;;  %1168 = vmatpush.bf16.msrb.mxu0 %v2127_v51  ;;  %v1595_v44 = vor.u32 %v2045_v40, %v1592_v41  ;;  %v2052_v51 = vld [vmem:[#allocation2 + $0xc4] sm:$0xf]  ;;  %v1723_v41 = vor.u32 %v2077_v36, %v1720_v37  ;;  %v2038_v37 = vld [vmem:[#allocation2 + $0x54] sm:$0xf] }
  0x42   :  { %1011 = vmatmul.bf16.gmra.mxu3 %v1743_v47  ;;  %981 = vmatmul.bf16.gmra.mxu0 %v1551_v54  ;;  %v1599_v47 = vor.u32 %v2050_v46, %v1598_v45  ;;  %v2057_v54 = vld [vmem:[#allocation2 + $0xe4] sm:$0xf0]  ;;  %v2351_v45 = vld [vmem:[%s2497_s2] ss:$0 sm:$0xff] }
  0x43   :  { %v1407_v36 = vld [vmem:[#allocation7 + $0x60] sm:$0xff] }
  0x44   :  { %1071 = vmatpush.bf16.msrb.mxu2 %v2110_v50  ;;  %1022 = vmatpush.bf16.msrb.mxu1 %v2102_v52  ;;  %v2135_v50 = vld [vmem:[#allocation5 + $0x158] sm:$0xff]  ;;  %v1616_v52 = vld [vmem:[#allocation2 + $0xe0] sm:$0xf0] }
  0x45   :  { %1120 = vmatpush.bf16.msrb.mxu3 %v2118_v53  ;;  %1169 = vmatpush.bf16.msrb.mxu0 %v2126_v56  ;;  %v1622_v53 = vld [vmem:[#allocation2 + $0xc8] sm:$0xf]  ;;  %v1624_v56 = vld [vmem:[#allocation2 + $0xe8] sm:$0xf0] }
  0x48   :  { %1072 = vmatpush.bf16.msrb.mxu2 %v2109_v55  ;;  %1023 = vmatpush.bf16.msrb.mxu1 %v2101_v57  ;;  %v2053_v55 = vld [vmem:[#allocation2 + $0xcc] sm:$0xf]  ;;  %v1619_v57 = vor.u32 %v2052_v51, %v1616_v52  ;;  %v2084_v51 = vld [vmem:[#allocation2 + $0x1c4] sm:$0xf] }
  0x49   :  { %1121 = vmatpush.bf16.msrb.mxu3 %v2117_v58  ;;  %1170 = vmatpush.bf16.msrb.mxu0 %v2125_v60  ;;  %v1623_v58 = vor.u32 %v2057_v54, %v1622_v53  ;;  %v1630_v60 = vld [vmem:[#allocation2 + $0xd0] sm:$0xf]  ;;  %v1744_v52 = vld [vmem:[#allocation2 + $0x1e0] sm:$0xf0]  ;;  %v1750_v53 = vld [vmem:[#allocation2 + $0x1c8] sm:$0xf] }
  0x4a   :  { %v2089_v54 = vld [vmem:[#allocation2 + $0x1e4] sm:$0xf0] }
  0x4c   :  { %1073 = vmatpush.bf16.msrb.mxu2 %v2108_v59  ;;  %1024 = vmatpush.bf16.msrb.mxu1 %v2100_v61  ;;  %v1627_v59 = vor.u32 %v2053_v55, %v1624_v56  ;;  %v2058_v61 = vld [vmem:[#allocation2 + $0xec] sm:$0xf0]  ;;  %v2085_v55 = vld [vmem:[#allocation2 + $0x1cc] sm:$0xf] }
  0x4d   :  { %1122 = vmatpush.bf16.msrb.mxu3 %v2116_v62  ;;  %1171 = vmatpush.bf16.msrb.mxu0 %v2124_v8  ;;  %v1631_v62 = vor.u32 %v2058_v61, %v1630_v60  ;;  %v1752_v56 = vld [vmem:[#allocation2 + $0x1e8] sm:$0xf0]  ;;  %v1747_v60 = vor.u32 %v2084_v51, %v1744_v52  ;;  %v1751_v61 = vor.u32 %v2089_v54, %v1750_v53 }
  0x4f   :  { %1025 = vmatmul.bf16.vlgmr.msrb.gmra.mxu1 %v1523_v9  ;;  %1074 = vmatmul.bf16.vlgmr.msrb.gmra.mxu2 %v1527_v10  ;;  %v1659_v10 = vor.u32 %v2061_v6, %v1656_v7 }
  0x50   :  { %1262 = vmatpush.bf16.msra.mxu2 %v2147_v1  ;;  %1213 = vmatpush.bf16.msra.mxu1 %v2139_v5  ;;  %v2134_v1 = vld [vmem:[#allocation5 + $0x150] sm:$0xff]  ;;  %v2065_v5 = vld [vmem:[#allocation2 + $0x124] sm:$0xf0] }
  0x51   :  { %1311 = vmatpush.bf16.msra.mxu3 %v2155_v2  ;;  %v2060_v2 = vld [vmem:[#allocation2 + $0x104] sm:$0xf]  ;;  %v1655_v9 = vor.u32 %v2065_v5, %v1654_v4 }
  0x52   :  { %1123 = vmatmul.bf16.vlgmr.msrb.gmra.mxu3 %v1531_v11  ;;  %1172 = vmatmul.bf16.vlgmr.msrb.gmra.mxu0 %v1535_v17  ;;  %v1651_v8 = vor.u32 %v2060_v2, %v1648_v3  ;;  %v1662_v11 = vld [vmem:[#allocation2 + $0x110] sm:$0xf]  ;;  %v2068_v17 = vld [vmem:[#allocation2 + $0x144] sm:$0xf]  ;;  %v1410_v3 = vld [vmem:[#allocation7 + $0x78] sm:$0xff] }
  0x53   :  { %v1663_v13 = vor.u32 %v2066_v12, %v1662_v11  ;;  %v2090_v2 = vld [vmem:[#allocation2 + $0x1ec] sm:$0xf0]  ;;  %1415 = vmatpush.msra.mxu0 %v1410_v3  ;;  %v2030_v12 = vld [vmem:[#allocation2 + $0x14] sm:$0xf] }
  0x54   :  { %1263 = vmatpush.bf16.msra.mxu2 %v2146_v14  ;;  %1214 = vmatpush.bf16.msra.mxu1 %v2138_v16  ;;  %v2141_v14 = vld [vmem:[#allocation5 + $0x188] sm:$0xff] }
  0x55   :  { %1312 = vmatpush.bf16.msra.mxu3 %v2154_v15  ;;  %v2149_v15 = vld [vmem:[#allocation5 + $0x1c8] sm:$0xff] }
  0x56   :  { %v2133_v16 = vld [vmem:[#allocation5 + $0x148] sm:$0xff] }
  0x58   :  { %1264 = vmatpush.bf16.msra.mxu2 %v2145_v18  ;;  %1215 = vmatpush.bf16.msra.mxu1 %v2137_v20  ;;  %v1680_v18 = vld [vmem:[#allocation2 + $0x160] sm:$0xf0]  ;;  %v2073_v20 = vld [vmem:[#allocation2 + $0x164] sm:$0xf0] }
  0x59   :  { %1313 = vmatpush.bf16.msra.mxu3 %v2153_v19  ;;  %v1686_v19 = vld [vmem:[#allocation2 + $0x148] sm:$0xf]  ;;  %v1683_v23 = vor.u32 %v2068_v17, %v1680_v18  ;;  %v1544_v17 = vld [vmem:[#allocation2 + $0x38] sm:$0xf0] }
  0x5a   :  { %v1687_v24 = vor.u32 %v2073_v20, %v1686_v19 }
  0x5c   :  { %1265 = vmatpush.bf16.msra.mxu2 %v2144_v33  ;;  %1216 = vmatpush.bf16.msra.mxu1 %v2136_v35  ;;  %v1712_v33 = vld [vmem:[#allocation2 + $0x1a0] sm:$0xf0]  ;;  %v2081_v35 = vld [vmem:[#allocation2 + $0x1a4] sm:$0xf0] }
  0x5d   :  { %1314 = vmatpush.bf16.msra.mxu3 %v2152_v34  ;;  %v1718_v34 = vld [vmem:[#allocation2 + $0x188] sm:$0xf] }
  0x5e   :  { %v1719_v39 = vor.u32 %v2081_v35, %v1718_v34 }
  0x5f   :  { %1030 = vmatmul.bf16.gmra.mxu1 %v1555_v27  ;;  %1079 = vmatmul.bf16.gmra.mxu2 %v1559_v28  ;;  %v2074_v27 = vld [vmem:[#allocation2 + $0x16c] sm:$0xf0] }
  0x60   :  { %1266 = vmatpush.bf16.msra.mxu2 %v2143_v48  ;;  %1217 = vmatpush.bf16.msra.mxu1 %v2135_v50  ;;  %v1695_v28 = vor.u32 %v2074_v27, %v1694_v26  ;;  %v1408_v27 = vld [vmem:[#allocation7 + $0x68] sm:$0xff] }
  0x61   :  { %1315 = vmatpush.bf16.msra.mxu3 %v2151_v49 }
  0x62   :  { %1128 = vmatmul.bf16.gmra.mxu3 %v1563_v29  ;;  %1177 = vmatmul.bf16.gmra.mxu0 %v1567_v32  ;;  %v2140_v29 = vld [vmem:[#allocation5 + $0x180] sm:$0xff] }
  0x63   :  { %v2076_v32 = vld [vmem:[#allocation2 + $0x184] sm:$0xf] }
  0x64   :  { %1267 = vmatpush.bf16.msra.mxu2 %v2142_v63  ;;  %1218 = vmatpush.bf16.msra.mxu1 %v2134_v1  ;;  %v1715_v38 = vor.u32 %v2076_v32, %v1712_v33  ;;  %v1758_v1 = vld [vmem:[#allocation2 + $0x1d0] sm:$0xf] }
  0x65   :  { %1316 = vmatpush.bf16.msra.mxu3 %v2150_v0  ;;  %v1755_v0 = vor.u32 %v2085_v55, %v1752_v56  ;;  %v1759_v4 = vor.u32 %v2090_v2, %v1758_v1 }
  0x68   :  { %1268 = vmatpush.bf16.msra.mxu2 %v2141_v14  ;;  %1219 = vmatpush.bf16.msra.mxu1 %v2133_v16  ;;  %v1542_v14 = vld [vmem:[#allocation2 + $0x18] sm:$0xf]  ;;  %v2031_v16 = vld [vmem:[#allocation2 + $0x1c] sm:$0xf] }
  0x69   :  { %1317 = vmatpush.bf16.msra.mxu3 %v2149_v15  ;;  %v2035_v15 = vld [vmem:[#allocation2 + $0x34] sm:$0xf0]  ;;  %v1547_v26 = vor.u32 %v2031_v16, %v1544_v17  ;;  %v2047_v16 = vld [vmem:[#allocation2 + $0x9c] sm:$0xf] }
  0x6a   :  { %v1608_v17 = vld [vmem:[#allocation2 + $0xb8] sm:$0xf0] }
  0x6c   :  { %1269 = vmatpush.bf16.msra.mxu2 %v2140_v29  ;;  %1220 = vmatpush.bf16.msra.mxu1 %v2132_v31 }
  0x6d   :  { %1318 = vmatpush.bf16.msra.mxu3 %v2148_v30 }
  0x6f   :  { %1035 = vmatmul.bf16.gmra.mxu1 %v1587_v42  ;;  %1084 = vmatmul.bf16.gmra.mxu2 %v1591_v43  ;;  %v1726_v42 = vld [vmem:[#allocation2 + $0x190] sm:$0xf] }
  0x70   :  { %v2082_v43 = vld [vmem:[#allocation2 + $0x1ac] sm:$0xf0] }
  0x72   :  { %1133 = vmatmul.bf16.gmra.mxu3 %v1595_v44  ;;  %1182 = vmatmul.bf16.gmra.mxu0 %v1599_v47  ;;  %v1727_v44 = vor.u32 %v2082_v43, %v1726_v42  ;;  %v2039_v43 = vld [vmem:[#allocation2 + $0x5c] sm:$0xf] }
  0x7f   :  { %1040 = vmatmul.bf16.gmra.mxu1 %v1619_v57  ;;  %1089 = vmatmul.bf16.gmra.mxu2 %v1623_v58 }
  0x82   :  { %1138 = vmatmul.bf16.gmra.mxu3 %v1627_v59  ;;  %1187 = vmatmul.bf16.gmra.mxu0 %v1631_v62 }
  0x8f   :  { %1045 = vmatmul.bf16.gmra.mxu1 %v1651_v8  ;;  %1094 = vmatmul.bf16.gmra.mxu2 %v1655_v9 }
  0x92   :  { %1143 = vmatmul.bf16.gmra.mxu3 %v1659_v10  ;;  %1192 = vmatmul.bf16.gmra.mxu0 %v1663_v13  ;;  %v1409_v10 = vld [vmem:[#allocation7 + $0x70] sm:$0xff] }
  0x93   :  { %1416 = vmatpush.msra.mxu0 %v1409_v10  ;;  %v1536_v13 = vld [vmem:[#allocation2 + $0x30] sm:$0xf0] }
  0x94   :  { %v1539_v22 = vor.u32 %v2030_v12, %v1536_v13  ;;  %v1405_v10 = vld [vmem:[#allocation7 + $0x50] sm:$0xff]  ;;  %v1606_v13 = vld [vmem:[#allocation2 + $0x98] sm:$0xf] }
  0x95   :  { %1417 = vmatpush.msra.mxu0 %v1408_v27  ;;  %v1600_v12 = vld [vmem:[#allocation2 + $0xb0] sm:$0xf0]  ;;  %v1611_v27 = vor.u32 %v2047_v16, %v1608_v17  ;;  %v1672_v16 = vld [vmem:[#allocation2 + $0x138] sm:$0xf0] }
  0x97   :  { %1418 = vmatpush.msra.mxu0 %v1407_v36 }
  0x9f   :  { %1050 = vmatmul.bf16.gmra.mxu1 %v1683_v23  ;;  %1099 = vmatmul.bf16.gmra.mxu2 %v1687_v24  ;;  %v1543_v23 = vor.u32 %v2035_v15, %v1542_v14  ;;  %v2051_v14 = vld [vmem:[#allocation2 + $0xb4] sm:$0xf0] }
  0xa2   :  { %1148 = vmatmul.bf16.gmra.mxu3 %v1691_v25  ;;  %1197 = vmatmul.bf16.gmra.mxu0 %v1695_v28 }
  0xac   :  { %v2346_v40 = vpop.f32.mrf.mxu1 }
  0xaf   :  { %1055 = vmatmul.bf16.gmra.mxu1 %v1715_v38  ;;  %1104 = vmatmul.bf16.gmra.mxu2 %v1719_v39  ;;  %v977_v11 = vpop.f32.mrf.mxu0  ;;  %v1568_v38 = vld [vmem:[#allocation2 + $0x70] sm:$0xf0]  ;;  %v1574_v39 = vld [vmem:[#allocation2 + $0x58] sm:$0xf] }
  0xb0   :  { %v978_v19 = vadd.f32 %v2351_v45, %v977_v11  ;;  %v1571_v54 = vor.u32 %v2038_v37, %v1568_v38  ;;  %v2046_v11 = vld [vmem:[#allocation2 + $0x94] sm:$0xf]  ;;  %v1403_v38 = vld [vmem:[#allocation7 + $0x40] sm:$0xff] }
  0xb2   :  { %1153 = vmatmul.bf16.gmra.mxu3 %v1723_v41  ;;  %v997_v46 = vpop.f32.mrf.mxu2  ;;  %1202 = vmatmul.bf16.gmra.mxu0 %v1727_v44  ;;  %v2043_v41 = vld [vmem:[#allocation2 + $0x74] sm:$0xf0]  ;;  %v1576_v44 = vld [vmem:[#allocation2 + $0x78] sm:$0xf0] }
  0xb3   :  { %v2354_v47 = vadd.f32 %v2351_v45, %v997_v46  ;;  %v1575_v55 = vor.u32 %v2043_v41, %v1574_v39  ;;  %v2054_v39 = vld [vmem:[#allocation2 + $0xd4] sm:$0xf] }
  0xb4   :  { %v2359_v50 = vpop.f32.mrf.mxu1  ;;  %v1632_v41 = vld [vmem:[#allocation2 + $0xf0] sm:$0xf0] }
  0xb5   :  { %v1007_v48 = vpop.f32.mrf.mxu3 }
  0xb6   :  { %v2357_v49 = vadd.f32 %v2351_v45, %v1007_v48 }
  0xb7   :  { %v979_v29 = vpop.f32.mrf.mxu0 }
  0xb8   :  { %v980_v34 = vadd.f32 %v2351_v45, %v979_v29 }
  0xba   :  { %v999_v57 = vpop.f32.mrf.mxu2 }
  0xbb   :  { %v2362_v58 = vadd.f32 %v2351_v45, %v999_v57  ;;  %v1579_v57 = vor.u32 %v2039_v43, %v1576_v44  ;;  %v2059_v43 = vld [vmem:[#allocation2 + $0xf4] sm:$0xf0]  ;;  %v2055_v44 = vld [vmem:[#allocation2 + $0xdc] sm:$0xf] }
  0xbc   :  { %v2367_v63 = vpop.f32.mrf.mxu1 }
  0xbd   :  { %v1009_v59 = vpop.f32.mrf.mxu3 }
  0xbe   :  { %v2365_v62 = vadd.f32 %v2351_v45, %v1009_v59 }
  0xbf   :  { %1060 = vmatmul.bf16.gmra.mxu1 %v1747_v60  ;;  %1109 = vmatmul.bf16.gmra.mxu2 %v1751_v61  ;;  %v982_v46 = vpop.f32.mrf.mxu0  ;;  %v1406_v60 = vld [vmem:[#allocation7 + $0x58] sm:$0xff] }
  0xc0   :  { %v983_v51 = vadd.f32 %v2351_v45, %v982_v46  ;;  %1419 = vmatpush.msra.mxu0 %v1406_v60  ;;  %v1640_v46 = vld [vmem:[#allocation2 + $0xf8] sm:$0xf0] }
  0xc2   :  { %1158 = vmatmul.bf16.gmra.mxu3 %v1755_v0  ;;  %v1002_v5 = vpop.f32.mrf.mxu2  ;;  %1207 = vmatmul.bf16.gmra.mxu0 %v1759_v4 }
  0xc3   :  { %v2370_v6 = vadd.f32 %v2351_v45, %v1002_v5  ;;  %1420 = vmatpush.msra.mxu0 %v1405_v10  ;;  %v1401_v10 = vld [vmem:[#allocation7 + $0x30] sm:$0xff] }
  0xc4   :  { %v2375_v9 = vpop.f32.mrf.mxu1 }
  0xc5   :  { %v1012_v7 = vpop.f32.mrf.mxu3 }
  0xc6   :  { %v2373_v8 = vadd.f32 %v2351_v45, %v1012_v7 }
  0xc7   :  { %v984_v3 = vpop.f32.mrf.mxu0 }
  0xc8   :  { %v985_v5 = vadd.f32 %v2351_v45, %v984_v3 }
  0xca   :  { %v1004_v18 = vpop.f32.mrf.mxu2 }
  0xcb   :  { %v2379_v20 = vadd.f32 %v2351_v45, %v1004_v18 }
  0xcc   :  { %v1026_v25 = vpop.f32.mrf.mxu1 }
  0xcd   :  { %v1014_v21 = vpop.f32.mrf.mxu3  ;;  %v1027_v28 = vadd.f32 %v1026_v25, %v978_v19  ;;  %v988_v19 = vadd.f32 %v2351_v45, %v2346_v40  ;;  %v1607_v25 = vor.u32 %v2051_v14, %v1606_v13  ;;  %v1670_v13 = vld [vmem:[#allocation2 + $0x118] sm:$0xf] }
  0xce   :  { %v2382_v24 = vadd.f32 %v2351_v45, %v1014_v21  ;;  %v2067_v14 = vld [vmem:[#allocation2 + $0x134] sm:$0xf0] }
  0xcf   :  { %1221 = vmatmul.bf16.vlgmr.msra.gmra.mxu1 %v1539_v22  ;;  %1270 = vmatmul.bf16.vlgmr.msra.gmra.mxu2 %v1543_v23  ;;  %v1603_v23 = vor.u32 %v2046_v11, %v1600_v12  ;;  %v2062_v11 = vld [vmem:[#allocation2 + $0x114] sm:$0xf] }
  0xd0   :  { %v1664_v12 = vld [vmem:[#allocation2 + $0x130] sm:$0xf0] }
  0xd2   :  { %1319 = vmatmul.bf16.vlgmr.msra.gmra.mxu3 %v1547_v26  ;;  %v1075_v30 = vpop.f32.mrf.mxu2 }
  0xd3   :  { %v1076_v31 = vadd.f32 %v1075_v30, %v1027_v28  ;;  %v1404_v30 = vld [vmem:[#allocation7 + $0x48] sm:$0xff] }
  0xd4   :  { %v1028_v33 = vpop.f32.mrf.mxu1  ;;  %1421 = vmatpush.msra.mxu0 %v1404_v30 }
  0xd5   :  { %v1124_v32 = vpop.f32.mrf.mxu3  ;;  %v1029_v42 = vadd.f32 %v1028_v33, %v980_v34 }
  0xd6   :  { %v2385_v35 = vadd.f32 %v1124_v32, %v1076_v31  ;;  %v990_v32 = vadd.f32 %v2351_v45, %v2359_v50  ;;  %1422 = vmatpush.msra.mxu0 %v1403_v38  ;;  %v1702_v38 = vld [vmem:[#allocation2 + $0x158] sm:$0xf] }
  0xda   :  { %v1077_v48 = vpop.f32.mrf.mxu2 }
  0xdb   :  { %v1078_v52 = vadd.f32 %v1077_v48, %v1029_v42  ;;  %v1638_v42 = vld [vmem:[#allocation2 + $0xd8] sm:$0xf] }
  0xdc   :  { %v1031_v56 = vpop.f32.mrf.mxu1 }
  0xdd   :  { %v1126_v53 = vpop.f32.mrf.mxu3  ;;  %v1032_v61 = vadd.f32 %v1031_v56, %v983_v51  ;;  %v993_v51 = vadd.f32 %v2351_v45, %v2367_v63  ;;  %v1643_v56 = vor.u32 %v2055_v44, %v1640_v46 }
  0xde   :  { %v2388_v59 = vadd.f32 %v1126_v53, %v1078_v52  ;;  %v1635_v53 = vor.u32 %v2054_v39, %v1632_v41  ;;  %v2075_v39 = vld [vmem:[#allocation2 + $0x174] sm:$0xf0]  ;;  %v1704_v41 = vld [vmem:[#allocation2 + $0x178] sm:$0xf0] }
  0xdf   :  { %1226 = vmatmul.bf16.gmra.mxu1 %v1571_v54  ;;  %1275 = vmatmul.bf16.gmra.mxu2 %v1575_v55  ;;  %v1639_v54 = vor.u32 %v2059_v43, %v1638_v42 }
  0xe2   :  { %1324 = vmatmul.bf16.gmra.mxu3 %v1579_v57  ;;  %v1080_v0 = vpop.f32.mrf.mxu2 }
  0xe3   :  { %v1081_v1 = vadd.f32 %v1080_v0, %v1032_v61  ;;  %v1402_v61 = vld [vmem:[#allocation7 + $0x38] sm:$0xff] }
  0xe4   :  { %v1033_v4 = vpop.f32.mrf.mxu1  ;;  %1423 = vmatpush.msra.mxu0 %v1402_v61 }
  0xe5   :  { %v1129_v2 = vpop.f32.mrf.mxu3  ;;  %v1034_v15 = vadd.f32 %v1033_v4, %v985_v5 }
  0xe6   :  { %v2391_v7 = vadd.f32 %v1129_v2, %v1081_v1  ;;  %v995_v1 = vadd.f32 %v2351_v45, %v2375_v9  ;;  %1424 = vmatpush.msra.mxu0 %v1401_v10  ;;  %v1736_v10 = vld [vmem:[#allocation2 + $0x1b8] sm:$0xf0] }
  0xea   :  { %v1082_v18 = vpop.f32.mrf.mxu2 }
  0xeb   :  { %v1083_v21 = vadd.f32 %v1082_v18, %v1034_v15  ;;  %v2063_v15 = vld [vmem:[#allocation2 + $0x11c] sm:$0xf] }
  0xec   :  { %v1036_v26 = vpop.f32.mrf.mxu1  ;;  %v1675_v9 = vor.u32 %v2063_v15, %v1672_v16 }
  0xed   :  { %v1131_v22 = vpop.f32.mrf.mxu3  ;;  %v1037_v29 = vadd.f32 %v1036_v26, %v988_v19  ;;  %v1400_v26 = vld [vmem:[#allocation7 + $0x28] sm:$0xff] }
  0xee   :  { %v2395_v28 = vadd.f32 %v1131_v22, %v1083_v21  ;;  %v1667_v21 = vor.u32 %v2062_v11, %v1664_v12  ;;  %v1671_v22 = vor.u32 %v2067_v14, %v1670_v13  ;;  %1425 = vmatpush.msra.mxu0 %v1400_v26 }
  0xef   :  { %1231 = vmatmul.bf16.gmra.mxu1 %v1603_v23  ;;  %1280 = vmatmul.bf16.gmra.mxu2 %v1607_v25 }
  0xf2   :  { %1329 = vmatmul.bf16.gmra.mxu3 %v1611_v27  ;;  %v1085_v31 = vpop.f32.mrf.mxu2 }
  0xf3   :  { %v1086_v33 = vadd.f32 %v1085_v31, %v1037_v29 }
  0xf4   :  { %v1038_v34 = vpop.f32.mrf.mxu1 }
  0xf5   :  { %v1134_v40 = vpop.f32.mrf.mxu3  ;;  %v1039_v37 = vadd.f32 %v1038_v34, %v990_v32  ;;  %v2070_v34 = vld [vmem:[#allocation2 + $0x154] sm:$0xf] }
  0xf6   :  { %v2399_v36 = vadd.f32 %v1134_v40, %v1086_v33  ;;  %v1399_v40 = vld [vmem:[#allocation7 + $0x20] sm:$0xff] }
  0xf7   :  { %1426 = vmatpush.msra.mxu0 %v1399_v40  ;;  %v1766_v40 = vld [vmem:[#allocation2 + $0x1d8] sm:$0xf] }
  0xfa   :  { %v1087_v48 = vpop.f32.mrf.mxu2 }
  0xfb   :  { %v1088_v52 = vadd.f32 %v1087_v48, %v1039_v37  ;;  %v1696_v37 = vld [vmem:[#allocation2 + $0x170] sm:$0xf0]  ;;  %v1703_v48 = vor.u32 %v2075_v39, %v1702_v38 }
  0xfc   :  { %v1041_v55 = vpop.f32.mrf.mxu1  ;;  %v1699_v46 = vor.u32 %v2070_v34, %v1696_v37  ;;  %v2087_v34 = vld [vmem:[#allocation2 + $0x1dc] sm:$0xf] }
  0xfd   :  { %v1136_v50 = vpop.f32.mrf.mxu3  ;;  %v1042_v60 = vadd.f32 %v1041_v55, %v993_v51  ;;  %v1768_v37 = vld [vmem:[#allocation2 + $0x1f8] sm:$0xf0] }
  0xfe   :  { %v2403_v57 = vadd.f32 %v1136_v50, %v1088_v52 }
  0xff   :  { %1236 = vmatmul.bf16.gmra.mxu1 %v1635_v53  ;;  %1285 = vmatmul.bf16.gmra.mxu2 %v1639_v54 }
 0x102   :  { %1334 = vmatmul.bf16.gmra.mxu3 %v1643_v56  ;;  %v1090_v0 = vpop.f32.mrf.mxu2 }
 0x103   :  { %v1091_v2 = vadd.f32 %v1090_v0, %v1042_v60 }
 0x104   :  { %v1043_v3 = vpop.f32.mrf.mxu1 }
 0x105   :  { %v1139_v63 = vpop.f32.mrf.mxu3  ;;  %v1044_v5 = vadd.f32 %v1043_v3, %v995_v1  ;;  %v1397_v1 = vld [vmem:[#allocation7 + $0x10] sm:$0xff]  ;;  %v1734_v3 = vld [vmem:[#allocation2 + $0x198] sm:$0xf] }
 0x106   :  { %v2407_v4 = vadd.f32 %v1139_v63, %v1091_v2  ;;  %v2078_v2 = vld [vmem:[#allocation2 + $0x194] sm:$0xf] }
 0x107   :  { %v1728_v63 = vld [vmem:[#allocation2 + $0x1b0] sm:$0xf0] }
 0x108   :  { %v1731_v14 = vor.u32 %v2078_v2, %v1728_v63 }
 0x10a   :  { %v1092_v17 = vpop.f32.mrf.mxu2 }
 0x10b   :  { %v1093_v18 = vadd.f32 %v1092_v17, %v1044_v5  ;;  %v2083_v5 = vld [vmem:[#allocation2 + $0x1b4] sm:$0xf0] }
 0x10c   :  { %v1046_v45 = vpop.f32.mrf.mxu1  ;;  %v1735_v15 = vor.u32 %v2083_v5, %v1734_v3 }
 0x10d   :  { %v1141_v19 = vpop.f32.mrf.mxu3  ;;  %v1047_v25 = vadd.f32 %v1046_v45, %v2354_v47  ;;  %v2071_v47 = vld [vmem:[#allocation2 + $0x15c] sm:$0xf] }
 0x10e   :  { %v2409_v23 = vadd.f32 %v1141_v19, %v1093_v18  ;;  %v1707_v52 = vor.u32 %v2071_v47, %v1704_v41 }
 0x10f   :  { %1241 = vmatmul.bf16.gmra.mxu1 %v1667_v21  ;;  %1290 = vmatmul.bf16.gmra.mxu2 %v1671_v22  ;;  %v1173_v21 = vpop.f32.mrf.mxu0 }
 0x110   :  { %v1174_v3 = vadd.f32 %v1173_v21, %v2385_v35 }
 0x112   :  { %1339 = vmatmul.bf16.gmra.mxu3 %v1675_v9  ;;  %v1095_v27 = vpop.f32.mrf.mxu2 }
 0x113   :  { %v1096_v29 = vadd.f32 %v1095_v27, %v1047_v25 }
 0x114   :  { %v1048_v31 = vpop.f32.mrf.mxu1 }
 0x115   :  { %v1144_v30 = vpop.f32.mrf.mxu3  ;;  %v1049_v33 = vadd.f32 %v1048_v31, %v2362_v58  ;;  %v1398_v58 = vld [vmem:[#allocation7 + $0x18] sm:$0xff] }
 0x116   :  { %v2412_v32 = vadd.f32 %v1144_v30, %v1096_v29  ;;  %1427 = vmatpush.msra.mxu0 %v1398_v58  ;;  %v2086_v29 = vld [vmem:[#allocation2 + $0x1d4] sm:$0xf]  ;;  %v1395_v30 = vld [vmem:[#allocation7] sm:$0xff] }
 0x117   :  { %v1175_v31 = vpop.f32.mrf.mxu0 }
 0x118   :  { %1428 = vmatpush.msra.mxu0 %v1397_v1 }
 0x11a   :  { %v1097_v42 = vpop.f32.mrf.mxu2 }
 0x11b   :  { %v1098_v43 = vadd.f32 %v1097_v42, %v1049_v33  ;;  %v1760_v33 = vld [vmem:[#allocation2 + $0x1f0] sm:$0xf0] }
 0x11c   :  { %v1051_v51 = vpop.f32.mrf.mxu1  ;;  %v1763_v41 = vor.u32 %v2086_v29, %v1760_v33 }
 0x11d   :  { %v1146_v44 = vpop.f32.mrf.mxu3  ;;  %v1052_v53 = vadd.f32 %v1051_v51, %v2370_v6  ;;  %v2079_v6 = vld [vmem:[#allocation2 + $0x19c] sm:$0xf] }
 0x11e   :  { %v2415_v50 = vadd.f32 %v1146_v44, %v1098_v43  ;;  %v1739_v17 = vor.u32 %v2079_v6, %v1736_v10  ;;  %v1771_v44 = vor.u32 %v2087_v34, %v1768_v37 }
 0x11f   :  { %1246 = vmatmul.bf16.gmra.mxu1 %v1699_v46  ;;  %1295 = vmatmul.bf16.gmra.mxu2 %v1703_v48  ;;  %v1178_v48 = vpop.f32.mrf.mxu0 }
 0x122   :  { %1344 = vmatmul.bf16.gmra.mxu3 %v1707_v52  ;;  %v1100_v54 = vpop.f32.mrf.mxu2 }
 0x123   :  { %v1101_v55 = vadd.f32 %v1100_v54, %v1052_v53 }
 0x124   :  { %v1053_v60 = vpop.f32.mrf.mxu1 }
 0x125   :  { %v1149_v56 = vpop.f32.mrf.mxu3  ;;  %v1054_v0 = vadd.f32 %v1053_v60, %v2379_v20  ;;  %v1396_v20 = vld [vmem:[#allocation7 + $0x8] sm:$0xff] }
 0x126   :  { %v2418_v61 = vadd.f32 %v1149_v56, %v1101_v55  ;;  %1429 = vmatpush.msra.mxu0 %v1396_v20 }
 0x127   :  { %v1180_v1 = vpop.f32.mrf.mxu0 }
 0x128   :  { %1430 = vmatpush.msra.mxu0 %v1395_v30  ;;  %v1181_v34 = vadd.f32 %v1180_v1, %v2395_v28 }
 0x12a   :  { %v1102_v11 = vpop.f32.mrf.mxu2 }
 0x12b   :  { %v1103_v12 = vadd.f32 %v1102_v11, %v1054_v0 }
 0x12c   :  { %v1056_v16 = vpop.f32.mrf.mxu1 }
 0x12d   :  { %v1151_v13 = vpop.f32.mrf.mxu3  ;;  %v1057_v19 = vadd.f32 %v1056_v16, %v2357_v49  ;;  %v2091_v49 = vld [vmem:[#allocation2 + $0x1f4] sm:$0xf0] }
 0x12e   :  { %v2421_v18 = vadd.f32 %v1151_v13, %v1103_v12  ;;  %v1767_v42 = vor.u32 %v2091_v49, %v1766_v40 }
 0x12f   :  { %1251 = vmatmul.bf16.gmra.mxu1 %v1731_v14  ;;  %1300 = vmatmul.bf16.gmra.mxu2 %v1735_v15  ;;  %v1183_v15 = vpop.f32.mrf.mxu0 }
 0x132   :  { %1349 = vmatmul.bf16.gmra.mxu3 %v1739_v17  ;;  %v1105_v22 = vpop.f32.mrf.mxu2 }
 0x133   :  { %v1106_v45 = vadd.f32 %v1105_v22, %v1057_v19 }
 0x134   :  { %v1058_v25 = vpop.f32.mrf.mxu1 }
 0x135   :  { %v1154_v9 = vpop.f32.mrf.mxu3  ;;  %v1059_v27 = vadd.f32 %v1058_v25, %v2365_v62 }
 0x136   :  { %v2424_v26 = vadd.f32 %v1154_v9, %v1106_v45  ;;  %v1179_v9 = vadd.f32 %v1178_v48, %v2391_v7 }
 0x13a   :  { %v1107_v38 = vpop.f32.mrf.mxu2 }
 0x13b   :  { %v1108_v39 = vadd.f32 %v1107_v38, %v1059_v27  ;;  %v1185_v27 = vpop.f32.mrf.mxu0 }
 0x13c   :  { %v1061_v43 = vpop.f32.mrf.mxu1 }
 0x13d   :  { %v1156_v47 = vpop.f32.mrf.mxu3  ;;  %v1062_v62 = vadd.f32 %v1061_v43, %v2373_v8  ;;  %v1360_v8 = vlaneseq }
 0x13e   :  { %v2427_v46 = vadd.f32 %v1156_v47, %v1108_v39 }
 0x13f   :  { %1256 = vmatmul.bf16.gmra.mxu1 %v1763_v41  ;;  %1305 = vmatmul.bf16.gmra.mxu2 %v1767_v42  ;;  %v2436_v10 = vand.u32 127, %v1360_v8 }
 0x141   :  { %vm1362_vm0 = vcmp.lt.s32.totalorder %v2436_v10, 32 }
 0x142   :  { %1354 = vmatmul.bf16.gmra.mxu3 %v1771_v44  ;;  %v1110_v51 = vpop.f32.mrf.mxu2 }
 0x143   :  { %v1111_v52 = vadd.f32 %v1110_v51, %v1062_v62  ;;  %v1188_v7 = vpop.f32.mrf.mxu0  ;;  %v1184_v62 = vadd.f32 %v1183_v15, %v2399_v36 }
 0x144   :  { %v1063_v58 = vpop.f32.mrf.mxu1 }
 0x145   :  { %v1159_v53 = vpop.f32.mrf.mxu3  ;;  %v1064_v55 = vadd.f32 %v1063_v58, %v2382_v24  ;;  %v1176_v24 = vadd.f32 %v1175_v31, %v2388_v59 }
 0x146   :  { %v2430_v54 = vadd.f32 %v1159_v53, %v1111_v52 }
 0x14a   :  { %v1112_v56 = vpop.f32.mrf.mxu2 }
 0x14b   :  { %v1113_v60 = vadd.f32 %v1112_v56, %v1064_v55  ;;  %v1190_v55 = vpop.f32.mrf.mxu0 }
 0x14c   :  { %v1222_v2 = vpop.f32.mrf.mxu1 }
 0x14d   :  { %v1161_v0 = vpop.f32.mrf.mxu3  ;;  %v1223_v5 = vadd.f32 %v1222_v2, %v1174_v3 }
 0x14e   :  { %v2433_v63 = vadd.f32 %v1161_v0, %v1113_v60  ;;  %v1186_v0 = vadd.f32 %v1185_v27, %v2403_v57 }
 0x152   :  { %v1271_v6 = vpop.f32.mrf.mxu2 }
 0x153   :  { %v1272_v11 = vadd.f32 %v1271_v6, %v1223_v5 }
 0x154   :  { %v1224_v13 = vpop.f32.mrf.mxu1 }
 0x155   :  { %v1320_v12 = vpop.f32.mrf.mxu3  ;;  %v1225_v17 = vadd.f32 %v1224_v13, %v1176_v24  ;;  %v1189_v13 = vadd.f32 %v1188_v7, %v2407_v4 }
 0x156   :  { %v1321_v14 = vadd.f32 %v1320_v12, %v1272_v11  ;;  %v1193_v12 = vpop.f32.mrf.mxu0 }
 0x158   :  { %v1363_v16 = vmax.f32 %v1321_v14, 0.0 }
 0x15a   :  { %v1379_v19 = vsel %vm1362_vm0, %v1363_v16, %v1321_v14  ;;  %v1273_v20 = vpop.f32.mrf.mxu2 }
 0x15b   :  { %1431 = vmatmul.f32.vlgmr.msra.gmra.mxu0 %v1379_v19  ;;  %v1274_v35 = vadd.f32 %v1273_v20, %v1225_v17 }
 0x15c   :  { %v1227_v22 = vpop.f32.mrf.mxu1 }
 0x15d   :  { %v1322_v21 = vpop.f32.mrf.mxu3  ;;  %v1228_v29 = vadd.f32 %v1227_v22, %v1179_v9 }
 0x15e   :  { %v1323_v45 = vadd.f32 %v1322_v21, %v1274_v35  ;;  %v1191_v35 = vadd.f32 %v1190_v55, %v2409_v23  ;;  %v1195_v22 = vpop.f32.mrf.mxu0 }
 0x15f   :  { %v1196_v7 = vadd.f32 %v1195_v22, %v2415_v50 }
 0x160   :  { %v1364_v25 = vmax.f32 %v1323_v45, 0.0 }
 0x162   :  { %v1380_v30 = vsel %vm1362_vm0, %v1364_v25, %v1323_v45  ;;  %v1276_v59 = vpop.f32.mrf.mxu2 }
 0x163   :  { %1434 = vmatmul.f32.gmra.mxu0 %v1380_v30  ;;  %v1277_v31 = vadd.f32 %v1276_v59, %v1228_v29  ;;  %v1194_v59 = vadd.f32 %v1193_v12, %v2412_v32 }
 0x164   :  { %v1229_v40 = vpop.f32.mrf.mxu1 }
 0x165   :  { %v1325_v33 = vpop.f32.mrf.mxu3  ;;  %v1230_v38 = vadd.f32 %v1229_v40, %v1181_v34 }
 0x166   :  { %v1326_v49 = vadd.f32 %v1325_v33, %v1277_v31  ;;  %v1198_v23 = vpop.f32.mrf.mxu0 }
 0x168   :  { %v1365_v37 = vmax.f32 %v1326_v49, 0.0 }
 0x16a   :  { %v1381_v39 = vsel %vm1362_vm0, %v1365_v37, %v1326_v49  ;;  %v1278_v47 = vpop.f32.mrf.mxu2 }
 0x16b   :  { %1437 = vmatmul.f32.gmra.mxu0 %v1381_v39  ;;  %v1279_v41 = vadd.f32 %v1278_v47, %v1230_v38 }
 0x16c   :  { %v1232_v43 = vpop.f32.mrf.mxu1 }
 0x16d   :  { %v1327_v42 = vpop.f32.mrf.mxu3  ;;  %v1233_v51 = vadd.f32 %v1232_v43, %v1184_v62 }
 0x16e   :  { %v1328_v44 = vadd.f32 %v1327_v42, %v1279_v41  ;;  %v1200_v62 = vpop.f32.mrf.mxu0 }
 0x170   :  { %v1366_v48 = vmax.f32 %v1328_v44, 0.0 }
 0x172   :  { %v1382_v52 = vsel %vm1362_vm0, %v1366_v48, %v1328_v44  ;;  %v1281_v28 = vpop.f32.mrf.mxu2 }
 0x173   :  { %1440 = vmatmul.f32.gmra.mxu0 %v1382_v52  ;;  %v1282_v53 = vadd.f32 %v1281_v28, %v1233_v51  ;;  %v1199_v52 = vadd.f32 %v1198_v23, %v2418_v61 }
 0x174   :  { %v1234_v56 = vpop.f32.mrf.mxu1 }
 0x175   :  { %v1330_v58 = vpop.f32.mrf.mxu3  ;;  %v1235_v2 = vadd.f32 %v1234_v56, %v1186_v0 }
 0x176   :  { %v1331_v60 = vadd.f32 %v1330_v58, %v1282_v53 }
 0x178   :  { %v1367_v1 = vmax.f32 %v1331_v60, 0.0 }
 0x17a   :  { %v1383_v8 = vsel %vm1362_vm0, %v1367_v1, %v1331_v60  ;;  %v1283_v36 = vpop.f32.mrf.mxu2  ;;  %v1203_v1 = vpop.f32.mrf.mxu0 }
 0x17b   :  { %1443 = vmatmul.f32.gmra.mxu0 %v1383_v8  ;;  %v1284_v3 = vadd.f32 %v1283_v36, %v1235_v2  ;;  %v1201_v2 = vadd.f32 %v1200_v62, %v2421_v18  ;;  %v2191_v62 = vld [vmem:[%s2499_s4] ss:$0 sm:$0xff]  ;;  %s2303_s4 = smov [#allocation8]  }
 0x17c   :  { %v1237_v6 = vpop.f32.mrf.mxu1  ;;  %s1500_s14 = sshll.u32 %s2303_s4, 4  ;;  %s1501_s14 = int_to_ptr.vmem [resolvable:$true] %s1500_s14 }
 0x17d   :  { %v1332_v5 = vpop.f32.mrf.mxu3  ;;  %v1238_v15 = vadd.f32 %v1237_v6, %v1189_v13  ;;  %v1204_v13 = vadd.f32 %v1203_v1, %v2424_v26 }
 0x17e   :  { %v1333_v11 = vadd.f32 %v1332_v5, %v1284_v3 }
 0x180   :  { %v1368_v14 = vmax.f32 %v1333_v11, 0.0 }
 0x182   :  { %v1384_v24 = vsel %vm1362_vm0, %v1368_v14, %v1333_v11  ;;  %v1286_v57 = vpop.f32.mrf.mxu2 }
 0x183   :  { %1446 = vmatmul.f32.gmra.mxu0 %v1384_v24  ;;  %v1287_v16 = vadd.f32 %v1286_v57, %v1238_v15  ;;  %v1205_v15 = vpop.f32.mrf.mxu0 }
 0x184   :  { %v1239_v19 = vpop.f32.mrf.mxu1 }
 0x185   :  { %v1335_v17 = vpop.f32.mrf.mxu3  ;;  %v1240_v45 = vadd.f32 %v1239_v19, %v1191_v35  ;;  %v1206_v35 = vadd.f32 %v1205_v15, %v2427_v46 }
 0x186   :  { %v1336_v20 = vadd.f32 %v1335_v17, %v1287_v16 }
 0x188   :  { %v1369_v21 = vmax.f32 %v1336_v20, 0.0 }
 0x18a   :  { %v1385_v9 = vsel %vm1362_vm0, %v1369_v21, %v1336_v20  ;;  %v1288_v4 = vpop.f32.mrf.mxu2 }
 0x18b   :  { %1449 = vmatmul.f32.gmra.mxu0 %v1385_v9  ;;  %v1289_v25 = vadd.f32 %v1288_v4, %v1240_v45  ;;  %v1208_v26 = vpop.f32.mrf.mxu0 }
 0x18c   :  { %v1242_v29 = vpop.f32.mrf.mxu1 }
 0x18d   :  { %v1337_v27 = vpop.f32.mrf.mxu3  ;;  %v1243_v33 = vadd.f32 %v1242_v29, %v1194_v59 }
 0x18e   :  { %v1338_v30 = vadd.f32 %v1337_v27, %v1289_v25 }
 0x190   :  { %v1370_v31 = vmax.f32 %v1338_v30, 0.0 }
 0x192   :  { %v1386_v40 = vsel %vm1362_vm0, %v1370_v31, %v1338_v30  ;;  %v1291_v49 = vpop.f32.mrf.mxu2  ;;  %v1209_v30 = vadd.f32 %v1208_v26, %v2430_v54 }
 0x193   :  { %1452 = vmatmul.f32.gmra.mxu0 %v1386_v40  ;;  %v1292_v34 = vadd.f32 %v1291_v49, %v1243_v33  ;;  %v1210_v49 = vpop.f32.mrf.mxu0 }
 0x194   :  { %v1244_v38 = vpop.f32.mrf.mxu1 }
 0x195   :  { %v1340_v37 = vpop.f32.mrf.mxu3  ;;  %v1245_v41 = vadd.f32 %v1244_v38, %v1196_v7  ;;  %v1211_v38 = vadd.f32 %v1210_v49, %v2433_v63 }
 0x196   :  { %v1341_v39 = vadd.f32 %v1340_v37, %v1292_v34 }
 0x198   :  { %v1371_v47 = vmax.f32 %v1341_v39, 0.0 }
 0x19a   :  { %v1387_v42 = vsel %vm1362_vm0, %v1371_v47, %v1341_v39  ;;  %v1293_v32 = vpop.f32.mrf.mxu2 }
 0x19b   :  { %1455 = vmatmul.f32.gmra.mxu0 %v1387_v42  ;;  %v1294_v43 = vadd.f32 %v1293_v32, %v1245_v41 }
 0x19c   :  { %v1247_v48 = vpop.f32.mrf.mxu1 }
 0x19d   :  { %v1342_v44 = vpop.f32.mrf.mxu3  ;;  %v1248_v53 = vadd.f32 %v1247_v48, %v1199_v52 }
 0x19e   :  { %v1343_v51 = vadd.f32 %v1342_v44, %v1294_v43 }
 0x1a0   :  { %v1372_v28 = vmax.f32 %v1343_v51, 0.0 }
 0x1a2   :  { %v1388_v58 = vsel %vm1362_vm0, %v1372_v28, %v1343_v51  ;;  %v1296_v50 = vpop.f32.mrf.mxu2 }
 0x1a3   :  { %1458 = vmatmul.f32.gmra.mxu0 %v1388_v58  ;;  %v1297_v55 = vadd.f32 %v1296_v50, %v1248_v53 }
 0x1a4   :  { %v1249_v60 = vpop.f32.mrf.mxu1 }
 0x1a5   :  { %v1345_v56 = vpop.f32.mrf.mxu3  ;;  %v1250_v36 = vadd.f32 %v1249_v60, %v1201_v2 }
 0x1a6   :  { %v1346_v0 = vadd.f32 %v1345_v56, %v1297_v55 }
 0x1a8   :  { %v1373_v8 = vmax.f32 %v1346_v0, 0.0 }
 0x1aa   :  { %v1389_v3 = vsel %vm1362_vm0, %v1373_v8, %v1346_v0  ;;  %v1298_v61 = vpop.f32.mrf.mxu2 }
 0x1ab   :  { %1461 = vmatmul.f32.gmra.mxu0 %v1389_v3  ;;  %v1299_v5 = vadd.f32 %v1298_v61, %v1250_v36 }
 0x1ac   :  { %v1252_v11 = vpop.f32.mrf.mxu1 }
 0x1ad   :  { %v1347_v6 = vpop.f32.mrf.mxu3  ;;  %v1253_v24 = vadd.f32 %v1252_v11, %v1204_v13 }
 0x1ae   :  { %v1348_v12 = vadd.f32 %v1347_v6, %v1299_v5 }
 0x1b0   :  { %v1374_v14 = vmax.f32 %v1348_v12, 0.0 }
 0x1b2   :  { %v1390_v57 = vsel %vm1362_vm0, %v1374_v14, %v1348_v12  ;;  %v1301_v18 = vpop.f32.mrf.mxu2 }
 0x1b3   :  { %1464 = vmatmul.f32.gmra.mxu0 %v1390_v57  ;;  %v1302_v16 = vadd.f32 %v1301_v18, %v1253_v24 }
 0x1b4   :  { %v1254_v19 = vpop.f32.mrf.mxu1 }
 0x1b5   :  { %v1350_v17 = vpop.f32.mrf.mxu3  ;;  %v1255_v22 = vadd.f32 %v1254_v19, %v1206_v35 }
 0x1b6   :  { %v1351_v20 = vadd.f32 %v1350_v17, %v1302_v16 }
 0x1b8   :  { %v1375_v21 = vmax.f32 %v1351_v20, 0.0 }
 0x1ba   :  { %v1391_v45 = vsel %vm1362_vm0, %v1375_v21, %v1351_v20  ;;  %v1303_v9 = vpop.f32.mrf.mxu2 }
 0x1bb   :  { %1467 = vmatmul.f32.gmra.mxu0 %v1391_v45  ;;  %v1304_v4 = vadd.f32 %v1303_v9, %v1255_v22 }
 0x1bc   :  { %v1257_v27 = vpop.f32.mrf.mxu1 }
 0x1bd   :  { %v1352_v25 = vpop.f32.mrf.mxu3  ;;  %v1258_v31 = vadd.f32 %v1257_v27, %v1209_v30 }
 0x1be   :  { %v1353_v29 = vadd.f32 %v1352_v25, %v1304_v4 }
 0x1c0   :  { %v1376_v59 = vmax.f32 %v1353_v29, 0.0 }
 0x1c2   :  { %v1392_v33 = vsel %vm1362_vm0, %v1376_v59, %v1353_v29  ;;  %v1306_v46 = vpop.f32.mrf.mxu2 }
 0x1c3   :  { %1470 = vmatmul.f32.gmra.mxu0 %v1392_v33  ;;  %v1307_v40 = vadd.f32 %v1306_v46, %v1258_v31 }
 0x1c4   :  { %v1259_v37 = vpop.f32.mrf.mxu1 }
 0x1c5   :  { %v1355_v23 = vpop.f32.mrf.mxu3  ;;  %v1260_v7 = vadd.f32 %v1259_v37, %v1211_v38 }
 0x1c6   :  { %v1356_v34 = vadd.f32 %v1355_v23, %v1307_v40 }
 0x1c8   :  { %v1377_v39 = vmax.f32 %v1356_v34, 0.0 }
 0x1ca   :  { %v1393_v47 = vsel %vm1362_vm0, %v1377_v39, %v1356_v34  ;;  %v1308_v54 = vpop.f32.mrf.mxu2 }
 0x1cb   :  { %1473 = vmatmul.f32.gmra.mxu0 %v1393_v47  ;;  %v1309_v41 = vadd.f32 %v1308_v54, %v1260_v7 }
 0x1cd   :  { %v1357_v42 = vpop.f32.mrf.mxu3 }
 0x1ce   :  { %v1358_v32 = vadd.f32 %v1357_v42, %v1309_v41 }
 0x1d0   :  { %v1378_v43 = vmax.f32 %v1358_v32, 0.0 }
 0x1d2   :  { %v1394_v44 = vsel %vm1362_vm0, %v1378_v43, %v1358_v32 }
 0x1d3   :  { %1476 = vmatmul.f32.gmra.mxu0 %v1394_v44 }
 0x1d8   :  { %v1432_v63 = vpop.f32.mrf.mxu0 }
 0x1d9   :  { %v1433_v48 = vadd.f32 %v2191_v62, %v1432_v63 }
 0x1db   :  { %1480 = vst [vmem:[#allocation8] sm:$0xff] %v1433_v48 }
 0x1e0   :  { %v1435_v51 = vpop.f32.mrf.mxu0 }
 0x1e1   :  { %v1436_v52 = vadd.f32 %v2191_v62, %v1435_v51 }
 0x1e3   :  { %1481 = vst [vmem:[#allocation8 + $0x8] sm:$0xff] %v1436_v52 }
 0x1e8   :  { %v1438_v28 = vpop.f32.mrf.mxu0 }
 0x1e9   :  { %v1439_v53 = vadd.f32 %v2191_v62, %v1438_v28 }
 0x1eb   :  { %1482 = vst [vmem:[#allocation8 + $0x10] sm:$0xff] %v1439_v53 }
 0x1f0   :  { %v1441_v58 = vpop.f32.mrf.mxu0 }
 0x1f1   :  { %v1442_v50 = vadd.f32 %v2191_v62, %v1441_v58 }
 0x1f3   :  { %1483 = vst [vmem:[#allocation8 + $0x18] sm:$0xff] %v1442_v50 }
 0x1f8   :  { %v1444_v55 = vpop.f32.mrf.mxu0 }
 0x1f9   :  { %v1445_v10 = vadd.f32 %v2191_v62, %v1444_v55 }
 0x1fb   :  { %1484 = vst [vmem:[#allocation8 + $0x20] sm:$0xff] %v1445_v10 }
 0x200   :  { %v1447_v56 = vpop.f32.mrf.mxu0 }
 0x201   :  { %v1448_v60 = vadd.f32 %v2191_v62, %v1447_v56 }
 0x203   :  { %1485 = vst [vmem:[#allocation8 + $0x28] sm:$0xff] %v1448_v60 }
 0x208   :  { %v1450_v0 = vpop.f32.mrf.mxu0 }
 0x209   :  { %v1451_v1 = vadd.f32 %v2191_v62, %v1450_v0 }
 0x20b   :  { %1486 = vst [vmem:[#allocation8 + $0x30] sm:$0xff] %v1451_v1 }
 0x210   :  { %v1453_v2 = vpop.f32.mrf.mxu0 }
 0x211   :  { %v1454_v8 = vadd.f32 %v2191_v62, %v1453_v2 }
 0x213   :  { %1487 = vst [vmem:[#allocation8 + $0x38] sm:$0xff] %v1454_v8 }
 0x218   :  { %v1456_v36 = vpop.f32.mrf.mxu0 }
 0x219   :  { %v1457_v3 = vadd.f32 %v2191_v62, %v1456_v36 }
 0x21b   :  { %1488 = vst [vmem:[#allocation8 + $0x40] sm:$0xff] %v1457_v3 }
 0x220   :  { %v1459_v61 = vpop.f32.mrf.mxu0 }
 0x221   :  { %v1460_v5 = vadd.f32 %v2191_v62, %v1459_v61 }
 0x223   :  { %1489 = vst [vmem:[#allocation8 + $0x48] sm:$0xff] %v1460_v5 }
 0x228   :  { %v1462_v6 = vpop.f32.mrf.mxu0 }
 0x229   :  { %v1463_v11 = vadd.f32 %v2191_v62, %v1462_v6 }
 0x22b   :  { %1490 = vst [vmem:[#allocation8 + $0x50] sm:$0xff] %v1463_v11 }
 0x230   :  { %v1465_v12 = vpop.f32.mrf.mxu0 }
 0x231   :  { %v1466_v13 = vadd.f32 %v2191_v62, %v1465_v12 }
 0x233   :  { %1491 = vst [vmem:[#allocation8 + $0x58] sm:$0xff] %v1466_v13 }
 0x238   :  { %v1468_v14 = vpop.f32.mrf.mxu0 }
 0x239   :  { %v1469_v15 = vadd.f32 %v2191_v62, %v1468_v14 }
 0x23b   :  { %1492 = vst [vmem:[#allocation8 + $0x60] sm:$0xff] %v1469_v15 }
 0x240   :  { %v1471_v24 = vpop.f32.mrf.mxu0 }
 0x241   :  { %v1472_v57 = vadd.f32 %v2191_v62, %v1471_v24 }
 0x243   :  { %1493 = vst [vmem:[#allocation8 + $0x68] sm:$0xff] %v1472_v57 }
 0x248   :  { %v1474_v18 = vpop.f32.mrf.mxu0 }
 0x249   :  { %v1475_v16 = vadd.f32 %v2191_v62, %v1474_v18 }
 0x24b   :  { %1494 = vst [vmem:[#allocation8 + $0x70] sm:$0xff] %v1475_v16 }
 0x250   :  { %v1477_v17 = vpop.f32.mrf.mxu0 }
 0x251   :  { %v1478_v19 = vadd.f32 %v2191_v62, %v1477_v17 }
 0x253   :  { %1495 = vst [vmem:[#allocation8 + $0x78] sm:$0xff] %v1478_v19 }
 0x254   :  { %1508 = dma.vmem_to_hbm [thread:$0]  %s1501_s14, 2048, %s1503_s17, [#allocation4], %s2301_s11, %s2301_s11, %s2302_s0  }
 0x255   :  { %2292 = dma.done.wait [#allocation4], 2048  }
 0x256   :  { %2293 = vsyncadd [#allocation4], 4294965248 }
 0x257   :  { %1513 = vsyncpa [#allocation3], 1 }
 0x258   :  { %1514 = vsyncpa [#allocation6], 1 }
 0x259   :  { %1515 = vsyncpa [#allocation4], 1 }

</bundles_post_ra>
